<compile_context>
chip_gen: v5e
topology: v5e:2x2
jax: 0.10.0
libtpu: 0.0.40
codegen_flags: <defaults>
</compile_context>

<pallas_src>
import functools
import math

import numpy as np
import jax
import jax.numpy as jnp
from jax.experimental import pallas as pl
from jax.experimental.pallas import tpu as pltpu


# ----------------------------------------------------------------------------
# Parameter setup (buffer `pe`) — deterministic, replicates the __init__ loop:
#   pe[pos, i]   = sin(pos / 10000 ** (2*i     / d))   for i = 0, 2, 4, ...
#   pe[pos, i+1] = cos(pos / 10000 ** ((2*i+1) / d))
# (Intentionally keeps the module's non-canonical cos exponent.)
# ----------------------------------------------------------------------------
def build_pe(max_seq_length: int, embedding_dim: int) -> jnp.ndarray:
    pos = np.arange(max_seq_length, dtype=np.float32)[:, None]          # [L, 1]
    i_even = np.arange(0, embedding_dim, 2, dtype=np.float32)[None, :]  # [1, D/2]
    pe = np.zeros((max_seq_length, embedding_dim), dtype=np.float32)
    pe[:, 0::2] = np.sin(pos / (10000.0 ** (2.0 * i_even / embedding_dim)))
    pe[:, 1::2] = np.cos(pos / (10000.0 ** ((2.0 * i_even + 1.0) / embedding_dim)))
    return jnp.asarray(pe)  # [max_seq_length, embedding_dim]


# ----------------------------------------------------------------------------
# Kernels — pure VPU elementwise work on (TB, S, D) blocks.
# ----------------------------------------------------------------------------
def _pe_eval_kernel(x_ref, pe_ref, o_ref, *, scale):
    # x_ref/o_ref: (TB, S, D);  pe_ref: (S, D) broadcasts over the TB dim.
    o_ref[...] = x_ref[...] * scale + pe_ref[...]


def _pe_train_kernel(x_ref, pe_ref, mask_ref, o_ref, *, scale):
    # mask_ref already holds 0.0 or 1/keep_prob (inverted dropout), per element.
    o_ref[...] = (x_ref[...] * scale + pe_ref[...]) * mask_ref[...]


# ----------------------------------------------------------------------------
# Wrapper
# ----------------------------------------------------------------------------
def positional_encoder_forward(x, pe, *, dropout=0.1, training=False,
                               rng_key=None):
    """x: [B, S, D] float32; pe: [max_seq_length, D] float32."""
    B, S, D = x.shape
    scale = math.sqrt(D)          # math.sqrt(self.embedding_dim)
    pe_slice = pe[:S, :]          # self.pe[:, :seq_length]

    # --- block sizing: batch TB rows of [S, D] per grid step, ~2 MiB/block.
    # (Stays far under v7x's 64 MiB VMEM even with double-buffering of
    # x + mask + out blocks; big enough to approach HBM roofline.)
    itemsize = np.dtype(x.dtype).itemsize
    target_block_bytes = 2 * 1024 * 1024
    tb = max(1, min(B, target_block_bytes // max(1, S * D * itemsize)))
    grid = (pl.cdiv(B, tb),)

    # NOTE: if D is not a multiple of 128 the kernel is still correct (the
    # block spans the full D), just with masked partial stores.
    x_spec = pl.BlockSpec((tb, S, D), lambda b: (b, 0, 0))
    pe_spec = pl.BlockSpec((S, D), lambda b: (0, 0))      # resident across grid
    mask_spec = pl.BlockSpec((tb, S, D), lambda b: (b, 0, 0))
    out_spec = pl.BlockSpec((tb, S, D), lambda b: (b, 0, 0))
    out_shape = jax.ShapeDtypeStruct((B, S, D), x.dtype)

    compiler_params = pltpu.CompilerParams(
        dimension_semantics=("parallel",),
        vmem_limit_bytes=32 * 1024 * 1024,   # > v5e's 16 MiB default scoped limit
    )

    if (not training) or dropout == 0.0:
        return pl.pallas_call(
            functools.partial(_pe_eval_kernel, scale=scale),
            out_shape=out_shape,
            grid=grid,
            in_specs=[x_spec, pe_spec],
            out_specs=out_spec,
            compiler_params=compiler_params,
        )(x, pe_slice)

    # Training path: inverted dropout.  Keep-mask is drawn with jax.random
    # outside the kernel (works on TPU and in interpret mode) and pre-scaled
    # by 1/keep_prob so the kernel does a single multiply.
    keep_prob = 1.0 - dropout
    if rng_key is None:
        rng_key = jax.random.PRNGKey(0)
    keep = jax.random.bernoulli(rng_key, p=keep_prob, shape=(B, S, D))
    mask = keep.astype(x.dtype) * jnp.asarray(1.0 / keep_prob, dtype=x.dtype)

    return pl.pallas_call(
        functools.partial(_pe_train_kernel, scale=scale),
        out_shape=out_shape,
        grid=grid,
        in_specs=[x_spec, pe_spec, mask_spec],
        out_specs=out_spec,
        compiler_params=compiler_params,
    )(x, pe_slice, mask)


# ----------------------------------------------------------------------------
# Demo / self-check
# ----------------------------------------------------------------------------
if __name__ == "__main__":
    # Small shapes consistent with the module: [batch, seq, embedding_dim]
    B, S, D = 2, 8, 128
    MAX_SEQ = 16
    DROPOUT = 0.1

    key = jax.random.PRNGKey(0)
    x = jax.random.normal(key, (B, S, D), dtype=jnp.float32)

    pe = build_pe(MAX_SEQ, D)

    # ---- Eval-mode forward (dropout is identity in eval, as nn.Dropout.eval()).
    out_eval = positional_encoder_forward(x, pe, dropout=DROPOUT, training=False)
    out_eval = jax.block_until_ready(out_eval)

    ref_eval = x * math.sqrt(D) + pe[:S, :][None, :, :]
    np.testing.assert_allclose(np.asarray(out_eval), np.asarray(ref_eval),
                               rtol=1e-6, atol=1e-6)

    # ---- Training-mode forward (inverted dropout with a deterministic key).
    drop_key = jax.random.PRNGKey(1234)
    out_train = positional_encoder_forward(x, pe, dropout=DROPOUT,
                                           training=True, rng_key=drop_key)
    out_train = jax.block_until_ready(out_train)
    assert out_train.shape == (B, S, D)

    keep_ref = jax.random.bernoulli(drop_key, p=1.0 - DROPOUT, shape=(B, S, D))
    mask_ref = keep_ref.astype(jnp.float32) * jnp.float32(1.0 / (1.0 - DROPOUT))
    ref_train = (x * math.sqrt(D) + pe[:S, :][None, :, :]) * mask_ref
    np.testing.assert_allclose(np.asarray(out_train), np.asarray(ref_train),
                               rtol=1e-5, atol=1e-5)

    print("KERNEL_OK")
</pallas_src>

<mosaic_0001>
module attributes {stable_mosaic.version = 11 : i64} {
  func.func @_pe_eval_kernel(%arg0: i32, %arg1: memref<2x8x128xf32, #tpu.memory_space<vmem>>, %arg2: memref<8x128xf32, #tpu.memory_space<vmem>>, %arg3: memref<2x8x128xf32, #tpu.memory_space<vmem>>) attributes {dimension_semantics = [#tpu.dimension_semantics<parallel>], iteration_bounds = array<i64: 1>, scalar_prefetch = 0 : i64, scratch_operands = 0 : i64, tpu.core_type = #tpu.core_type<tc>, window_params = [{transform_indices = @transform_0, window_bounds = array<i64: 2, 8, 128>}, {pipeline_mode = #tpu.pipeline_mode<synchronous>, transform_indices = @transform_1, window_bounds = array<i64: 8, 128>}, {transform_indices = @transform_2, window_bounds = array<i64: 2, 8, 128>}]} {
    %c0 = arith.constant 0 : index
    %c0_0 = arith.constant 0 : index
    %c0_1 = arith.constant 0 : index
    %0 = vector.load %arg1[%c0, %c0_0, %c0_1] : memref<2x8x128xf32, #tpu.memory_space<vmem>>, vector<2x8x128xf32>
    %cst = arith.constant 11.3137083 : f32
    %1 = vector.broadcast %cst : f32 to vector<2x8x128xf32>
    %2 = arith.mulf %0, %1 : vector<2x8x128xf32>
    %c0_2 = arith.constant 0 : index
    %c0_3 = arith.constant 0 : index
    %3 = vector.load %arg2[%c0_2, %c0_3] : memref<8x128xf32, #tpu.memory_space<vmem>>, vector<8x128xf32>
    %4 = vector.shape_cast %3 : vector<8x128xf32> to vector<1x8x128xf32>
    %5 = vector.broadcast %4 : vector<1x8x128xf32> to vector<2x8x128xf32>
    %6 = arith.addf %2, %5 : vector<2x8x128xf32>
    %c0_4 = arith.constant 0 : index
    %c0_5 = arith.constant 0 : index
    %c0_6 = arith.constant 0 : index
    %7 = vector.load %arg3[%c0_4, %c0_5, %c0_6] : memref<2x8x128xf32, #tpu.memory_space<vmem>>, vector<2x8x128xf32>
    tpu.vector_store %arg3[%c0_4, %c0_5, %c0_6], %6 {strides = array<i32>} : memref<2x8x128xf32, #tpu.memory_space<vmem>>, vector<2x8x128xf32>,
    return
  }
  func.func @transform_0(%arg0: i32) -> (i32, i32, i32) {
    %c0_i32 = arith.constant 0 : i32
    %c0_i32_0 = arith.constant 0 : i32
    %c0_i32_1 = arith.constant 0 : i32
    return %arg0, %c0_i32, %c0_i32_0 : i32, i32, i32
  }
  func.func @transform_1(%arg0: i32) -> (i32, i32) {
    %c0_i32 = arith.constant 0 : i32
    %c0_i32_0 = arith.constant 0 : i32
    %c0_i32_1 = arith.constant 0 : i32
    return %c0_i32, %c0_i32_0 : i32, i32
  }
  func.func @transform_2(%arg0: i32) -> (i32, i32, i32) {
    %c0_i32 = arith.constant 0 : i32
    %c0_i32_0 = arith.constant 0 : i32
    %c0_i32_1 = arith.constant 0 : i32
    return %arg0, %c0_i32, %c0_i32_0 : i32, i32, i32
  }
}

</mosaic_0001>

<bundles_post_ra>
// kernel: tpu_custom_call.1
= control target key start
LH: loop header
LB: loop body
LE: loop exit
PB: predicated region body
PF: predicated region fallthrough
CT: control target
= control target key end

     0   :  { %7 = vsyncpa [#allocation3], 0  ;;  %s183_s0 = inlined_call_operand.hbm [shape: f32[2,8,128], index: 0, kind: input, shape index: {}]   ;;  %s184_s1 = inlined_call_operand.hbm [shape: f32[8,128], index: 1, kind: input, shape index: {}]   ;;  %s185_s2 = inlined_call_operand.hbm [shape: f32[2,8,128], index: 2, kind: output, shape index: {}]  }
   0x1   :  { %8 = vsyncpa [#allocation6], 0 }
   0x2   :  { %9 = vsyncpa [#allocation4], 0  ;;  %s14_s11 = sshll.u32 %s183_s0, 4  ;;  %s154_s12 = smov [#allocation2]   ;;  %s15_s11 = int_to_ptr.hbm [resolvable:$true] %s14_s11 }
   0x3   :  { %s16_s13 = sshll.u32 %s154_s12, 4  ;;  %s28_s16 = sshll.u32 %s184_s1, 4  ;;  %s17_s13 = int_to_ptr.vmem [resolvable:$true] %s16_s13  ;;  %s29_s16 = int_to_ptr.hbm [resolvable:$true] %s28_s16 }
   0x4   :  { %s155_s17 = smov 128   ;;  %s156_s18 = smov 8  }
   0x5   :  { %22 = dma.hbm_to_vmem [thread:$0]  %s15_s11, 256, %s17_s13, [#allocation3], %s155_s17, %s155_s17, %s156_s18  }
   0x6   :  { %s157_s19 = smov [#allocation5]  }
   0x7   :  { %s30_s20 = sshll.u32 %s157_s19, 4  ;;  %s31_s20 = int_to_ptr.vmem [resolvable:$true] %s30_s20 }
   0x8   :  { %33 = dma.hbm_to_vmem [thread:$0]  %s29_s16, 128, %s31_s20, [#allocation6]  }
   0x9   :  { %148 = dma.done.wait [#allocation3], 256  }
   0xa   :  { %149 = vsyncadd [#allocation3], 4294967040 }
   0xb   :  { %150 = dma.done.wait [#allocation6], 128  }
   0xc   :  { %151 = vsyncadd [#allocation6], 4294967168  ;;  %v42_v0 = vld [vmem:[#allocation2] sm:$0xff]  ;;  %v46_v1 = vld [vmem:[#allocation5] sm:$0xff]  ;;  %s158_s0 = smov [#allocation7]   ;;  %s57_s23 = sshll.u32 %s185_s2, 4  ;;  %s58_s23 = int_to_ptr.hbm [resolvable:$true] %s57_s23 }
   0xd   :  { %v43_v2 = vld [vmem:[#allocation2 + $0x8] sm:$0xff]  ;;  %v44_v3 = vmul.f32 11.313708, %v42_v0  ;;  %s55_s21 = sshll.u32 %s158_s0, 4  ;;  %s56_s21 = int_to_ptr.vmem [resolvable:$true] %s55_s21 }
   0xe   :  { %v45_v4 = vmul.f32 11.313708, %v43_v2 }
   0xf   :  { %v47_v5 = vadd.f32 %v46_v1, %v44_v3 }
  0x10   :  { %v48_v6 = vadd.f32 %v46_v1, %v45_v4 }
  0x11   :  { %49 = vst [vmem:[#allocation7] sm:$0xff] %v47_v5 }
  0x12   :  { %50 = vst [vmem:[#allocation7 + $0x8] sm:$0xff] %v48_v6 }
  0x13   :  { %63 = dma.vmem_to_hbm [thread:$0]  %s56_s21, 256, %s58_s23, [#allocation4], %s155_s17, %s155_s17, %s156_s18  }
  0x14   :  { %152 = dma.done.wait [#allocation4], 256  }
  0x15   :  { %153 = vsyncadd [#allocation4], 4294967040 }
  0x16   :  { %68 = vsyncpa [#allocation3], 1 }
  0x17   :  { %69 = vsyncpa [#allocation6], 1 }
  0x18   :  { %70 = vsyncpa [#allocation4], 1 }

</bundles_post_ra>
